<compile_context>
chip_gen: v7x
topology: tpu7x:2x2x1
jax: 0.10.0
libtpu: 0.0.40
codegen_flags: <defaults>
</compile_context>

<pallas_src>
import functools

import numpy as np
import jax
import jax.numpy as jnp
from jax import lax
from jax.experimental import pallas as pl
from jax.experimental.pallas import tpu as pltpu


_ROWS_PER_STEP = 512   # max selected rows gathered per grid step (lane-dense chunk)

# Flipped to False automatically if this JAX build rejects pl.Buffered(1).
_SINGLE_BUFFER_SOURCES = True


def _round_up(x, m):
    return ((x + m - 1) // m) * m


def _device_kind():
    try:
        return jax.devices()[0].device_kind.lower()
    except Exception:
        return ""


def _vmem_limit_bytes():
    kind = _device_kind()
    if ("v5" in kind) or ("v6" in kind):
        # v5e / v6e have 128 MiB physical VMEM: keep large systems resident.
        return 100 * 1024 * 1024
    # v7x has only 64 MiB per TensorCore (and unknown parts): leave headroom
    # for double-buffered outputs and compiler scratch.
    return 48 * 1024 * 1024


def _atom_block():
    kind = _device_kind()
    # Contraction tile for the one-hot MXU gather: 128 matches v5e's 128x128
    # MXUs; 256 matches v6e/v7x's 256x256 MXUs.
    if "v5" in kind:
        return 128
    return 256


def _gather_kernel(idx_ref, pred_ref, tgt_ref, pred_out_ref, tgt_out_ref, *,
                   atom_block):
    """One grid step gathers `rows` selected atoms into lane-dense (d, rows)
    output blocks via one-hot MXU matmuls.  Sources (d, n_atoms) are VMEM
    resident (constant block index); indices are a lane-dense VMEM vector."""
    c = pl.program_id(0)
    rows = pred_out_ref.shape[1]
    n = pred_ref.shape[1]

    # (1, rows) int32 — one vector load, no per-row SMEM scalar reads.
    idx_row = idx_ref[pl.ds(c, 1), :]

    acc_p = None
    acc_t = None
    # Static loop over atom blocks bounds the one-hot intermediate to
    # (atom_block, rows) and matches the MXU tile per generation.
    for a0 in range(0, n, atom_block):
        blk = min(atom_block, n - a0)
        # one-hot[a, r] = 1 iff selected index r equals atom a0+a.
        hit = (lax.broadcasted_iota(jnp.int32, (blk, rows), 0) + a0) == idx_row
        pp = jnp.dot(pred_ref[:, a0:a0 + blk], hit.astype(pred_ref.dtype),
                     preferred_element_type=jnp.float32,
                     precision=lax.Precision.HIGHEST)
        tt = jnp.dot(tgt_ref[:, a0:a0 + blk], hit.astype(tgt_ref.dtype),
                     preferred_element_type=jnp.float32,
                     precision=lax.Precision.HIGHEST)
        acc_p = pp if acc_p is None else acc_p + pp
        acc_t = tt if acc_t is None else acc_t + tt

    pred_out_ref[...] = acc_p.astype(pred_out_ref.dtype)
    tgt_out_ref[...] = acc_t.astype(tgt_out_ref.dtype)


def _gather_rows_pallas(idx2d, pred_t, tgt_t, rows, single_buffer):
    """Gather columns idx2d (num_chunks, rows; -1 = padding) from the
    transposed sources pred_t (d_p, n) and tgt_t (d_t, n)."""
    num_chunks = idx2d.shape[0]
    d_p, n = pred_t.shape
    d_t, _ = tgt_t.shape
    g = num_chunks * rows

    def _const_spec(shape):
        if single_buffer:
            # Constant block index -> double buffering buys nothing; halve the
            # resident VMEM footprint of the sources.
            return pl.BlockSpec(shape, lambda c: (0, 0),
                                pipeline_mode=pl.Buffered(1))
        return pl.BlockSpec(shape, lambda c: (0, 0))

    grid_spec = pltpu.PrefetchScalarGridSpec(
        num_scalar_prefetch=0,
        grid=(num_chunks,),
        in_specs=[
            _const_spec((num_chunks, rows)),   # all indices resident (tiny)
            _const_spec((d_p, n)),             # full pred source, fetched once
            _const_spec((d_t, n)),             # full target source, fetched once
        ],
        out_specs=[
            pl.BlockSpec((d_p, rows), lambda c: (0, c)),   # lane-dense stores
            pl.BlockSpec((d_t, rows), lambda c: (0, c)),
        ],
    )

    if num_chunks >= 2 and num_chunks % 2 == 0:
        # v7x: shard independent chunks across the two TensorCores.
        dims = (pltpu.CORE_PARALLEL,)
    else:
        dims = (pltpu.PARALLEL,)

    return pl.pallas_call(
        functools.partial(_gather_kernel, atom_block=_atom_block()),
        grid_spec=grid_spec,
        out_shape=(
            jax.ShapeDtypeStruct((d_p, g), pred_t.dtype),
            jax.ShapeDtypeStruct((d_t, g), tgt_t.dtype),
        ),
        compiler_params=pltpu.CompilerParams(
            dimension_semantics=dims,
            vmem_limit_bytes=_vmem_limit_bytes(),
        ),
    )(idx2d, pred_t, tgt_t)
    # TODO(synk): for very large n_atoms (sources approaching the VMEM budget,
    # esp. v7x's 64 MiB), keep sources in pl.ANY (HBM) and gather block-wise
    # with pl.when-skipped atom blocks instead of full VMEM residency.


@functools.partial(jax.jit, static_argnames=("single_buffer",))
def _compact_and_gather(mask, pred2d, tgt2d, *, single_buffer):
    """Single jitted pipeline: mask -> compacted indices -> padded one-hot
    gather.  Returns padded transposed gathers plus the selected count."""
    n = mask.shape[0]
    idx = jnp.nonzero(mask, size=n, fill_value=-1)[0].astype(jnp.int32)
    count = jnp.sum(mask.astype(jnp.int32))

    # Pad the output row count so chunks are lane-dense (multiples of 128).
    g = _round_up(max(n, 1), 128)
    if g > _ROWS_PER_STEP:
        g = _round_up(g, _ROWS_PER_STEP)
        rows = _ROWS_PER_STEP
    else:
        rows = g
    pad = g - n
    if pad:
        idx = jnp.concatenate([idx, jnp.full((pad,), -1, jnp.int32)])
    idx2d = idx.reshape(g // rows, rows)

    pred_sel_t, tgt_sel_t = _gather_rows_pallas(
        idx2d, pred2d.T, tgt2d.T, rows, single_buffer)
    return pred_sel_t, tgt_sel_t, count


def _flatten_rows(a):
    """(n, ...) -> (n, prod(...)) plus trailing shape / original dtype."""
    a = jnp.asarray(a)
    orig_dtype = a.dtype
    n = a.shape[0]
    rest = tuple(a.shape[1:])
    d = int(np.prod(rest)) if rest else 1
    a2 = a.reshape(n, max(d, 1))
    if not jnp.issubdtype(a2.dtype, jnp.floating):
        # TODO(synk): one-hot MXU gather runs through f32; exact for integer
        # magnitudes < 2**24 only.
        a2 = a2.astype(jnp.float32)
    return a2, rest, orig_dtype


class ConsiderOnlySelectedAtoms:
    """JAX/Pallas port of schnetpack's ConsiderOnlySelectedAtoms constraint."""

    def __init__(self, selection_name):
        self.selection_name = selection_name

    def __call__(self, pred, targets, output_module):
        global _SINGLE_BUFFER_SOURCES

        name = output_module.name
        target_property = output_module.target_property

        sel = jnp.asarray(targets[self.selection_name])
        if sel.ndim != 1:
            raise ValueError("selection must be a per-atom 1-D tensor")
        mask = sel != 0
        n = mask.shape[0]
        if n == 0:
            raise ValueError("empty selection tensor")

        pred_arr = jnp.asarray(pred[name])
        tgt_arr = jnp.asarray(targets[target_property])
        # Bounds safety: dynamic indices never exceed these row counts.
        if pred_arr.shape[0] != n or tgt_arr.shape[0] != n:
            raise ValueError("pred/target leading dim must match selection length")

        pred2d, pred_rest, pred_dtype = _flatten_rows(pred_arr)
        tgt2d, tgt_rest, tgt_dtype = _flatten_rows(tgt_arr)

        try:
            pred_sel_t, tgt_sel_t, count = _compact_and_gather(
                mask, pred2d, tgt2d, single_buffer=_SINGLE_BUFFER_SOURCES)
        except Exception:
            if not _SINGLE_BUFFER_SOURCES:
                raise
            # This JAX build rejects pl.Buffered(1); fall back to defaults.
            _SINGLE_BUFFER_SOURCES = False
            pred_sel_t, tgt_sel_t, count = _compact_and_gather(
                mask, pred2d, tgt2d, single_buffer=False)

        # The original module returns data-dependent shapes; realizing them
        # needs exactly one host sync for the selected-atom count.
        # TODO(synk): a fully jittable variant would return the padded
        # (d, g) gathers plus `count` and let the consumer slice lazily.
        k = int(count)
        pred_sel = pred_sel_t[:, :k].T.reshape((k,) + pred_rest).astype(pred_dtype)
        tgt_sel = tgt_sel_t[:, :k].T.reshape((k,) + tgt_rest).astype(tgt_dtype)

        pred = dict(pred)
        targets = dict(targets)
        pred[name] = pred_sel
        targets[target_property] = tgt_sel
        return pred, targets


if __name__ == "__main__":
    key = jax.random.PRNGKey(0)
    k1, k2, k3 = jax.random.split(key, 3)

    n_atoms, d = 24, 3  # e.g. forces: (n_atoms, 3)

    pred_forces = jax.random.normal(k1, (n_atoms, d), dtype=jnp.float32)
    target_forces = jax.random.normal(k2, (n_atoms, d), dtype=jnp.float32)
    selection = jax.random.bernoulli(k3, p=0.5, shape=(n_atoms,))

    class _ForcesOutput:  # stand-in for schnetpack's output module
        name = "forces"
        target_property = "forces_true"

    pred = {"forces": pred_forces}
    targets = {"forces_true": target_forces, "considered": selection}

    constraint = ConsiderOnlySelectedAtoms("considered")
    new_pred, new_targets = constraint(pred, targets, _ForcesOutput())

    jax.block_until_ready(new_pred["forces"])
    jax.block_until_ready(new_targets["forces_true"])

    # reference check against plain indexing semantics
    ref_idx = np.nonzero(np.asarray(selection))[0]
    ref_pred = np.asarray(pred_forces)[ref_idx]
    ref_tgt = np.asarray(target_forces)[ref_idx]
    assert new_pred["forces"].shape == ref_pred.shape
    assert new_targets["forces_true"].shape == ref_tgt.shape
    assert np.allclose(np.asarray(new_pred["forces"]), ref_pred,
                       rtol=1e-6, atol=1e-6)
    assert np.allclose(np.asarray(new_targets["forces_true"]), ref_tgt,
                       rtol=1e-6, atol=1e-6)

    print("KERNEL_OK")
</pallas_src>

<mosaic_0001>
module attributes {stable_mosaic.version = 11 : i64} {
  func.func @_gather_kernel(%arg0: i32, %arg1: memref<1x128xi32, #tpu.memory_space<vmem>>, %arg2: memref<3x24xf32, #tpu.memory_space<vmem>>, %arg3: memref<3x24xf32, #tpu.memory_space<vmem>>, %arg4: memref<3x128xf32, #tpu.memory_space<vmem>>, %arg5: memref<3x128xf32, #tpu.memory_space<vmem>>) attributes {dimension_semantics = [#tpu.dimension_semantics<parallel>], iteration_bounds = array<i64: 1>, scalar_prefetch = 0 : i64, scratch_operands = 0 : i64, tpu.core_type = #tpu.core_type<tc>, window_params = [{pipeline_mode = #tpu.pipeline_mode<synchronous>, transform_indices = @transform_0, window_bounds = array<i64: 1, 128>}, {pipeline_mode = #tpu.pipeline_mode<synchronous>, transform_indices = @transform_1, window_bounds = array<i64: 3, 24>}, {pipeline_mode = #tpu.pipeline_mode<synchronous>, transform_indices = @transform_2, window_bounds = array<i64: 3, 24>}, {transform_indices = @transform_3, window_bounds = array<i64: 3, 128>}, {transform_indices = @transform_4, window_bounds = array<i64: 3, 128>}]} {
    %0 = arith.index_cast %arg0 : i32 to index
    %c0 = arith.constant 0 : index
    %1 = vector.load %arg1[%0, %c0] : memref<1x128xi32, #tpu.memory_space<vmem>>, vector<1x128xi32>
    %2 = tpu.iota {dimensions = array<i32: 0>} : vector<24x128xi32>
    %c0_i32 = arith.constant 0 : i32
    %3 = vector.broadcast %c0_i32 : i32 to vector<24x128xi32>
    %4 = arith.addi %2, %3 : vector<24x128xi32>
    %5 = vector.broadcast %1 : vector<1x128xi32> to vector<24x128xi32>
    %6 = arith.cmpi eq, %4, %5 : vector<24x128xi32>
    %c0_0 = arith.constant 0 : index
    %c0_1 = arith.constant 0 : index
    %7 = vector.load %arg2[%c0_0, %c0_1] : memref<3x24xf32, #tpu.memory_space<vmem>>, vector<3x24xf32>
    %8 = arith.extui %6 : vector<24x128xi1> to vector<24x128xi32>
    %9 = arith.sitofp %8 : vector<24x128xi32> to vector<24x128xf32>
    %cst = arith.constant dense<0.000000e+00> : vector<3x128xf32>
    %10 = tpu.matmul %7, %9, %cst {dimension_numbers = #tpu.dot_dimension_numbers<[1], [0], [0], [1], [0, 0, 1, 1], [], []>, precision = #tpu.contract_precision<fp32>} : vector<3x24xf32>, vector<24x128xf32>, vector<3x128xf32> -> vector<3x128xf32>
    %c0_2 = arith.constant 0 : index
    %c0_3 = arith.constant 0 : index
    %11 = vector.load %arg3[%c0_2, %c0_3] : memref<3x24xf32, #tpu.memory_space<vmem>>, vector<3x24xf32>
    %12 = arith.extui %6 : vector<24x128xi1> to vector<24x128xi32>
    %13 = arith.sitofp %12 : vector<24x128xi32> to vector<24x128xf32>
    %cst_4 = arith.constant dense<0.000000e+00> : vector<3x128xf32>
    %14 = tpu.matmul %11, %13, %cst_4 {dimension_numbers = #tpu.dot_dimension_numbers<[1], [0], [0], [1], [0, 0, 1, 1], [], []>, precision = #tpu.contract_precision<fp32>} : vector<3x24xf32>, vector<24x128xf32>, vector<3x128xf32> -> vector<3x128xf32>
    %c0_5 = arith.constant 0 : index
    %c0_6 = arith.constant 0 : index
    %15 = vector.load %arg4[%c0_5, %c0_6] : memref<3x128xf32, #tpu.memory_space<vmem>>, vector<3x128xf32>
    tpu.vector_store %arg4[%c0_5, %c0_6], %10 {strides = array<i32>} : memref<3x128xf32, #tpu.memory_space<vmem>>, vector<3x128xf32>,
    %c0_7 = arith.constant 0 : index
    %c0_8 = arith.constant 0 : index
    %16 = vector.load %arg5[%c0_7, %c0_8] : memref<3x128xf32, #tpu.memory_space<vmem>>, vector<3x128xf32>
    tpu.vector_store %arg5[%c0_7, %c0_8], %14 {strides = array<i32>} : memref<3x128xf32, #tpu.memory_space<vmem>>, vector<3x128xf32>,
    return
  }
  func.func @transform_0(%arg0: i32) -> (i32, i32) {
    %c0_i32 = arith.constant 0 : i32
    %c0_i32_0 = arith.constant 0 : i32
    %c0_i32_1 = arith.constant 0 : i32
    return %c0_i32, %c0_i32_0 : i32, i32
  }
  func.func @transform_1(%arg0: i32) -> (i32, i32) {
    %c0_i32 = arith.constant 0 : i32
    %c0_i32_0 = arith.constant 0 : i32
    %c0_i32_1 = arith.constant 0 : i32
    return %c0_i32, %c0_i32_0 : i32, i32
  }
  func.func @transform_2(%arg0: i32) -> (i32, i32) {
    %c0_i32 = arith.constant 0 : i32
    %c0_i32_0 = arith.constant 0 : i32
    %c0_i32_1 = arith.constant 0 : i32
    return %c0_i32, %c0_i32_0 : i32, i32
  }
  func.func @transform_3(%arg0: i32) -> (i32, i32) {
    %c0_i32 = arith.constant 0 : i32
    %c0_i32_0 = arith.constant 0 : i32
    return %c0_i32, %arg0 : i32, i32
  }
  func.func @transform_4(%arg0: i32) -> (i32, i32) {
    %c0_i32 = arith.constant 0 : i32
    %c0_i32_0 = arith.constant 0 : i32
    return %c0_i32, %arg0 : i32, i32
  }
}

module attributes {stable_mosaic.version = 11 : i64} {
  func.func @_gather_kernel(%arg0: i32, %arg1: memref<1x128xi32, #tpu.memory_space<vmem>>, %arg2: memref<3x24xf32, #tpu.memory_space<vmem>>, %arg3: memref<3x24xf32, #tpu.memory_space<vmem>>, %arg4: memref<3x128xf32, #tpu.memory_space<vmem>>, %arg5: memref<3x128xf32, #tpu.memory_space<vmem>>) attributes {dimension_semantics = [#tpu.dimension_semantics<parallel>], iteration_bounds = array<i64: 1>, scalar_prefetch = 0 : i64, scratch_operands = 0 : i64, tpu.core_type = #tpu.core_type<tc>, window_params = [{pipeline_mode = #tpu.pipeline_mode<synchronous>, transform_indices = @transform_0, window_bounds = array<i64: 1, 128>}, {pipeline_mode = #tpu.pipeline_mode<synchronous>, transform_indices = @transform_1, window_bounds = array<i64: 3, 24>}, {pipeline_mode = #tpu.pipeline_mode<synchronous>, transform_indices = @transform_2, window_bounds = array<i64: 3, 24>}, {transform_indices = @transform_3, window_bounds = array<i64: 3, 128>}, {transform_indices = @transform_4, window_bounds = array<i64: 3, 128>}]} {
    %0 = arith.index_cast %arg0 : i32 to index
    %c0 = arith.constant 0 : index
    %1 = vector.load %arg1[%0, %c0] : memref<1x128xi32, #tpu.memory_space<vmem>>, vector<1x128xi32>
    %2 = tpu.iota {dimensions = array<i32: 0>} : vector<24x128xi32>
    %c0_i32 = arith.constant 0 : i32
    %3 = vector.broadcast %c0_i32 : i32 to vector<24x128xi32>
    %4 = arith.addi %2, %3 : vector<24x128xi32>
    %5 = vector.broadcast %1 : vector<1x128xi32> to vector<24x128xi32>
    %6 = arith.cmpi eq, %4, %5 : vector<24x128xi32>
    %c0_0 = arith.constant 0 : index
    %c0_1 = arith.constant 0 : index
    %7 = vector.load %arg2[%c0_0, %c0_1] : memref<3x24xf32, #tpu.memory_space<vmem>>, vector<3x24xf32>
    %8 = arith.extui %6 : vector<24x128xi1> to vector<24x128xi32>
    %9 = arith.sitofp %8 : vector<24x128xi32> to vector<24x128xf32>
    %cst = arith.constant dense<0.000000e+00> : vector<3x128xf32>
    %10 = tpu.matmul %7, %9, %cst {dimension_numbers = #tpu.dot_dimension_numbers<[1], [0], [0], [1], [0, 0, 1, 1], [], []>, precision = #tpu.contract_precision<fp32>} : vector<3x24xf32>, vector<24x128xf32>, vector<3x128xf32> -> vector<3x128xf32>
    %c0_2 = arith.constant 0 : index
    %c0_3 = arith.constant 0 : index
    %11 = vector.load %arg3[%c0_2, %c0_3] : memref<3x24xf32, #tpu.memory_space<vmem>>, vector<3x24xf32>
    %12 = arith.extui %6 : vector<24x128xi1> to vector<24x128xi32>
    %13 = arith.sitofp %12 : vector<24x128xi32> to vector<24x128xf32>
    %cst_4 = arith.constant dense<0.000000e+00> : vector<3x128xf32>
    %14 = tpu.matmul %11, %13, %cst_4 {dimension_numbers = #tpu.dot_dimension_numbers<[1], [0], [0], [1], [0, 0, 1, 1], [], []>, precision = #tpu.contract_precision<fp32>} : vector<3x24xf32>, vector<24x128xf32>, vector<3x128xf32> -> vector<3x128xf32>
    %c0_5 = arith.constant 0 : index
    %c0_6 = arith.constant 0 : index
    %15 = vector.load %arg4[%c0_5, %c0_6] : memref<3x128xf32, #tpu.memory_space<vmem>>, vector<3x128xf32>
    tpu.vector_store %arg4[%c0_5, %c0_6], %10 {strides = array<i32>} : memref<3x128xf32, #tpu.memory_space<vmem>>, vector<3x128xf32>,
    %c0_7 = arith.constant 0 : index
    %c0_8 = arith.constant 0 : index
    %16 = vector.load %arg5[%c0_7, %c0_8] : memref<3x128xf32, #tpu.memory_space<vmem>>, vector<3x128xf32>
    tpu.vector_store %arg5[%c0_7, %c0_8], %14 {strides = array<i32>} : memref<3x128xf32, #tpu.memory_space<vmem>>, vector<3x128xf32>,
    return
  }
  func.func @transform_0(%arg0: i32) -> (i32, i32) {
    %c0_i32 = arith.constant 0 : i32
    %c0_i32_0 = arith.constant 0 : i32
    %c0_i32_1 = arith.constant 0 : i32
    return %c0_i32, %c0_i32_0 : i32, i32
  }
  func.func @transform_1(%arg0: i32) -> (i32, i32) {
    %c0_i32 = arith.constant 0 : i32
    %c0_i32_0 = arith.constant 0 : i32
    %c0_i32_1 = arith.constant 0 : i32
    return %c0_i32, %c0_i32_0 : i32, i32
  }
  func.func @transform_2(%arg0: i32) -> (i32, i32) {
    %c0_i32 = arith.constant 0 : i32
    %c0_i32_0 = arith.constant 0 : i32
    %c0_i32_1 = arith.constant 0 : i32
    return %c0_i32, %c0_i32_0 : i32, i32
  }
  func.func @transform_3(%arg0: i32) -> (i32, i32) {
    %c0_i32 = arith.constant 0 : i32
    %c0_i32_0 = arith.constant 0 : i32
    return %c0_i32, %arg0 : i32, i32
  }
  func.func @transform_4(%arg0: i32) -> (i32, i32) {
    %c0_i32 = arith.constant 0 : i32
    %c0_i32_0 = arith.constant 0 : i32
    return %c0_i32, %arg0 : i32, i32
  }
}

</mosaic_0001>

<bundles_post_ra>
// kernel: _compact_and_gather.1
= control target key start
LH: loop header
LB: loop body
LE: loop exit
PB: predicated region body
PF: predicated region fallthrough
CT: control target
= control target key end

     0   :  { %10 = vsyncpa [#allocation3], 0  ;;  %v19_v1 = vlaneseq  ;;  %v1308_v2 = vmov 0.0|0.0   ;;  %vm37_vm0 = vcmask 195584   ;;  %vm1309_vm1 = vmmov 0   ;;  %s1508_s0 = inlined_call_operand.vmem [shape: s32[1,128], index: 0, kind: input, shape index: {}]   ;;  %s1509_s1 = inlined_call_operand.vmem [shape: f32[3,24], index: 1, kind: input, shape index: {}]   ;;  %s1510_s2 = inlined_call_operand.vmem [shape: f32[3,24], index: 2, kind: input, shape index: {}]   ;;  %s1511_s3 = inlined_call_operand.hbm [shape: f32[3,128], index: 3, kind: output, shape index: {0}]   ;;  %s1512_s4 = inlined_call_operand.hbm [shape: f32[3,128], index: 4, kind: output, shape index: {1}]  }
   0x1   :  { %v1019_v0 = vld [vmem:[%s1508_s0] ss:$0 sm:$0xff]  ;;  %1197 = vmatprep.subr.bf16.mxu0 %v1308_v2  ;;  %1215 = vmatprep.subr.bf16.mxu1 %v1308_v2  ;;  %v1310_v5 = vmov 0.0  }
   0x2   :  { %v30_v3 = vld [vmem:[%s1509_s1] sm:$0x7]  ;;  %v20_v4 = vshrl.u32 %v19_v1, 7  ;;  %1095 = vmatprep.mubr.msk.f32.mxu0 %vm1309_vm1, %v1310_v5  ;;  %1149 = vmatprep.mubr.msk.f32.mxu1 %vm1309_vm1, %v1310_v5 }
   0x3   :  { %v39_v6 = vsel %vm37_vm0, %v30_v3, 0  ;;  %v513_v7 = vld [vmem:[%s1510_s2] sm:$0x7] }
   0x4   :  { %11 = vsyncpa [#allocation5], 0  ;;  %v1355_v8 = vand.u32 4294901760, %v39_v6  ;;  %v515_v9 = vsel %vm37_vm0, %v513_v7, 0  ;;  %v21_v10 = vadd.s32 8, %v20_v4  ;;  %vm27_vm2 = vcmp.eq.s32.totalorder %v20_v4, %v1019_v0  ;;  %s1313_s1 = smov [#allocation2]  }
   0x5   :  { %v22_v11 = vadd.s32 16, %v20_v4  ;;  %v1357_v12 = vand.u32 4294901760, %v515_v9  ;;  %v1020_v13 = vsel %vm27_vm2, 1.0, %v1310_v5  ;;  %v1311_v22 = vmov 1.0|1.0   ;;  %s997_s2 = sshll.u32 %s1313_s1, 4  ;;  %s998_s2 = int_to_ptr.vmem [resolvable:$true] %s997_s2 }
   0x6   :  { %v1361_v14 = vsub.f32 %v39_v6, %v1355_v8  ;;  %vm28_vm3 = vcmp.eq.s32.totalorder %v21_v10, %v1019_v0  ;;  %v1363_v15 = vsub.f32 %v1020_v13, %v1020_v13  ;;  %v1312_v33 = vmov 1.0   ;;  %s1314_s20 = smov [#allocation4]   ;;  %s1260_s22 = scalar_lea.vmem %s998_s2, 64 }
   0x7   :  { %vm1365_vm4 = vcmp.eq.s32.totalorder %v22_v11, %v1019_v0  ;;  %v1370_v17 = vsub.f32 %v515_v9, %v1357_v12  ;;  %v1021_v18 = vsel %vm28_vm3, 1.0, %v1310_v5  ;;  %vm1373_vm5 = vmpackc.low %vm28_vm3, %vm27_vm2  ;;  %s1007_s21 = sshll.u32 %s1314_s20, 4  ;;  %p1261_p0 = scmp.ne.s32.totalorder %s998_s2, %s1260_s22  ;;  %s1477_s21 = int_to_ptr.vmem [resolvable:$true] %s1007_s21 }
   0x8   :  { %v111_v20 = vand.u32 4294901760, %v1361_v14  ;;  %v1022_v21 = vsel %vm1365_vm4, 1.0, %v1310_v5  ;;  %1199 = vmatpush3.bf16.msk.msra.mxu0 %vm1373_vm5, %v1311_v22  ;;  %v128_v23 = vsub.f32 %v1021_v18, %v1021_v18  ;;  %1217 = vmatpush3.bf16.msk.msra.mxu1 %vm1373_vm5, %v1311_v22  ;;  %v122_v25 = vand.u32 4294901760, %v1363_v15  ;;  %p1265_p1 = scmp.lt.s32.totalorder %s998_s2, %s998_s2  ;;  %p1266_p2 = scmp.lt.s32.totalorder %s1260_s22, %s1260_s22 }
   0x9   :  { %v587_v24 = vand.u32 4294901760, %v1370_v17  ;;  %v135_v26 = vsub.f32 %v1022_v21, %v1022_v21  ;;  %1093 = vmatprep.subr.mxu0 %v1310_v5  ;;  %1147 = vmatprep.subr.mxu1 %v1310_v5 }
   0xa   :  { %v112_v27 = vsub.f32 %v1361_v14, %v111_v20  ;;  %v123_v29 = vsub.f32 %v1363_v15, %v122_v25  ;;  %v129_v30 = vand.u32 4294901760, %v128_v23  ;;  %v1204_v41 = vpack.c.bf16 %v128_v23, %v1363_v15  ;;  %p1267_p3 = por %p1266_p2, %p1265_p1 }
   0xb   :  { %v588_v28 = vsub.f32 %v1370_v17, %v587_v24  ;;  %v136_v31 = vand.u32 4294901760, %v135_v26 }
   0xc   :  { %v113_v32 = vand.u32 4294901760, %v112_v27  ;;  %1094 = vmatpush3.msk.msra.mxu0 %vm1365_vm4, %v1312_v33  ;;  %1148 = vmatpush3.msk.msra.mxu1 %vm1365_vm4, %v1312_v33  ;;  %v124_v35 = vand.u32 4294901760, %v123_v29  ;;  %v130_v36 = vsub.f32 %v128_v23, %v129_v30  ;;  %v1210_v42 = vpack.c.bf16 %v129_v30, %v122_v25  ;;  %p1268_p4 = pnand %p1267_p3, %p1261_p0 }
   0xd   :  { %v589_v34 = vand.u32 4294901760, %v588_v28  ;;  %1200 = vmatprep.subr.bf16.mxu0 %v1308_v2  ;;  %1218 = vmatprep.subr.bf16.mxu1 %v1308_v2  ;;  %v137_v38 = vsub.f32 %v135_v26, %v136_v31 }
   0xe   :  { %1096 = vmatmul.mubr.f32.vlgmr.msra.gmra.mrb[0].mxu0 %v113_v32  ;;  %v131_v37 = vand.u32 4294901760, %v130_v36 }
   0xf   :  { %1150 = vmatmul.mubr.f32.vlgmr.msra.gmra.mrb[0].mxu1 %v589_v34  ;;  %1104 = vmatprep.mubr.msk.f32.mxu0 %vm1309_vm1, %v1310_v5  ;;  %v138_v40 = vand.u32 4294901760, %v137_v38 }
  0x10   :  { %1158 = vmatprep.mubr.msk.f32.mxu1 %vm1309_vm1, %v1310_v5  ;;  %v1201_v39 = vpack.c.bf16 %v131_v37, %v124_v35 }
  0x12   :  { %1202 = vmatpush3.bf16.msra.mxu0 %v1201_v39  ;;  %1220 = vmatpush3.bf16.msra.mxu1 %v1201_v39 }
  0x13   :  { %1102 = vmatprep.subr.mxu0 %v1310_v5  ;;  %1156 = vmatprep.subr.mxu1 %v1310_v5 }
  0x16   :  { %1103 = vmatpush3.msra.mxu0 %v138_v40  ;;  %1157 = vmatpush3.msra.mxu1 %v138_v40 }
  0x17   :  { %1105 = vmatmul.mubr.f32.vlgmr.msra.gmra.mrb[0].mxu0 %v1355_v8  ;;  %1159 = vmatmul.mubr.f32.vlgmr.msra.gmra.mrb[0].mxu1 %v1357_v12 }
  0x18   :  { %1203 = vmatprep.subr.bf16.mxu0 %v1308_v2  ;;  %1221 = vmatprep.subr.bf16.mxu1 %v1308_v2 }
  0x19   :  { %1205 = vmatpush3.bf16.msra.mxu0 %v1204_v41  ;;  %1223 = vmatpush3.bf16.msra.mxu1 %v1204_v41 }
  0x1a   :  { %1111 = vmatprep.subr.mxu0 %v1310_v5  ;;  %1165 = vmatprep.subr.mxu1 %v1310_v5 }
  0x1b   :  { %1113 = vmatprep.mubr.msk.f32.mxu0 %vm1309_vm1, %v1310_v5  ;;  %1167 = vmatprep.mubr.msk.f32.mxu1 %vm1309_vm1, %v1310_v5 }
  0x1d   :  { %1112 = vmatpush3.msra.mxu0 %v135_v26  ;;  %1166 = vmatpush3.msra.mxu1 %v135_v26 }
  0x1e   :  { %1206 = vmatprep.subr.bf16.mxu0 %v1308_v2  ;;  %1224 = vmatprep.subr.bf16.mxu1 %v1308_v2 }
  0x1f   :  { %1114 = vmatmul.mubr.f32.vlgmr.msra.gmra.mrb[0].mxu0 %v1361_v14  ;;  %1168 = vmatmul.mubr.f32.vlgmr.msra.gmra.mrb[0].mxu1 %v1370_v17 }
  0x20   :  { %1208 = vmatpush3.bf16.msk.msra.mxu0 %vm1373_vm5, %v1311_v22  ;;  %1226 = vmatpush3.bf16.msk.msra.mxu1 %vm1373_vm5, %v1311_v22 }
  0x21   :  { %1120 = vmatprep.subr.mxu0 %v1310_v5  ;;  %1174 = vmatprep.subr.mxu1 %v1310_v5 }
  0x22   :  { %1122 = vmatprep.mubr.msk.f32.mxu0 %vm1309_vm1, %v1310_v5  ;;  %1176 = vmatprep.mubr.msk.f32.mxu1 %vm1309_vm1, %v1310_v5 }
  0x24   :  { %1121 = vmatpush3.msk.msra.mxu0 %vm1365_vm4, %v1312_v33  ;;  %1175 = vmatpush3.msk.msra.mxu1 %vm1365_vm4, %v1312_v33 }
  0x25   :  { %1209 = vmatprep.subr.bf16.mxu0 %v1308_v2  ;;  %1227 = vmatprep.subr.bf16.mxu1 %v1308_v2 }
  0x27   :  { %1123 = vmatmul.mubr.f32.vlgmr.msra.gmra.mrb[0].mxu0 %v111_v20  ;;  %1177 = vmatmul.mubr.f32.vlgmr.msra.gmra.mrb[0].mxu1 %v587_v24 }
  0x28   :  { %1211 = vmatpush3.bf16.msra.mxu0 %v1210_v42  ;;  %1229 = vmatpush3.bf16.msra.mxu1 %v1210_v42 }
  0x29   :  { %1129 = vmatprep.subr.mxu0 %v1310_v5  ;;  %1183 = vmatprep.subr.mxu1 %v1310_v5 }
  0x2a   :  { %1131 = vmatprep.mubr.msk.f32.mxu0 %vm1309_vm1, %v1310_v5  ;;  %1185 = vmatprep.mubr.msk.f32.mxu1 %vm1309_vm1, %v1310_v5 }
  0x2c   :  { %1130 = vmatpush3.msra.mxu0 %v136_v31  ;;  %1184 = vmatpush3.msra.mxu1 %v136_v31 }
  0x2d   :  { %1212 = vmatprep.subr.bf16.mxu0 %v1308_v2  ;;  %1230 = vmatprep.subr.bf16.mxu1 %v1308_v2 }
  0x2f   :  { %1132 = vmatmul.mubr.f32.vlgmr.msra.gmra.mrb[0].mxu0 %v1355_v8  ;;  %1186 = vmatmul.mubr.f32.vlgmr.msra.gmra.mrb[0].mxu1 %v1357_v12 }
  0x30   :  { %1214 = vmatpush3.bf16.msk.msra.mxu0 %vm1373_vm5, %v1311_v22  ;;  %1232 = vmatpush3.bf16.msk.msra.mxu1 %vm1373_vm5, %v1311_v22 }
  0x31   :  { %1138 = vmatprep.subr.mxu0 %v1310_v5  ;;  %1192 = vmatprep.subr.mxu1 %v1310_v5 }
  0x32   :  { %1140 = vmatprep.mubr.msk.f32.mxu0 %vm1309_vm1, %v1310_v5  ;;  %1194 = vmatprep.mubr.msk.f32.mxu1 %vm1309_vm1, %v1310_v5 }
  0x34   :  { %1139 = vmatpush3.msk.msra.mxu0 %vm1365_vm4, %v1312_v33  ;;  %1193 = vmatpush3.msk.msra.mxu1 %vm1365_vm4, %v1312_v33 }
  0x37   :  { %1141 = vmatmul.mubr.f32.vlgmr.msra.gmra.mrb[0].mxu0 %v1355_v8  ;;  %1195 = vmatmul.mubr.f32.vlgmr.msra.gmra.mrb[0].mxu1 %v1357_v12 }
 0x10a   :  { %v509_v43 = vpop.f32.mrb[0].mxu0  ;;  %v985_v44 = vpop.f32.mrb[0].mxu1 }
 0x10b   :  { %989 = vst [vmem:[#allocation2] sm:$0x7] %v509_v43  ;;  %990 = vst [vmem:[#allocation4] sm:$0x7] %v985_v44  ;;  %v1142_v45 = vpop.f32.mrb[1].mxu0  ;;  %v1196_v46 = vpop.f32.mrb[1].mxu1 }
 0x10c   :  { %1271 = shalt.err (!%p1268_p4)
}
 0x10d   :  { %s1272_s25 = scalar_lea.hbm %s1511_s3, 64 }
 0x10e   :  { %p1273_p5 = scmp.ne.s32.totalorder %s1511_s3, %s1272_s25  ;;  %p1276_p6 = scmp.lt.u32.totalorder %s1272_s25, %s1511_s3 }
 0x110   :  { %p1278_p7 = pnand %p1276_p6, %p1273_p5 }
 0x112   :  { %1281 = shalt.err (!%p1278_p7)
}
 0x113   :  { %1000 = dma.vmem_to_hbm [thread:$0]  %s998_s2, 64, %s1511_s3, [#allocation3]  }
 0x114   :  { %s1282_s6 = scalar_lea.vmem %s1477_s21, 64  ;;  %p1287_p9 = scmp.lt.s32.totalorder %s1477_s21, %s1477_s21 }
 0x115   :  { %p1283_p8 = scmp.ne.s32.totalorder %s1477_s21, %s1282_s6  ;;  %p1288_p10 = scmp.lt.s32.totalorder %s1282_s6, %s1282_s6 }
 0x117   :  { %p1289_p11 = por %p1288_p10, %p1287_p9 }
 0x119   :  { %p1290_p12 = pnand %p1289_p11, %p1283_p8 }
 0x11b   :  { %1293 = shalt.err (!%p1290_p12)
}
 0x11c   :  { %s1294_s9 = scalar_lea.hbm %s1512_s4, 64 }
 0x11d   :  { %p1295_p13 = scmp.ne.s32.totalorder %s1512_s4, %s1294_s9  ;;  %p1298_p0 = scmp.lt.u32.totalorder %s1294_s9, %s1512_s4 }
 0x11f   :  { %p1300_p1 = pnand %p1298_p0, %p1295_p13 }
 0x121   :  { %1303 = shalt.err (!%p1300_p1)
}
 0x122   :  { %1010 = dma.vmem_to_hbm [thread:$0]  %s1477_s21, 64, %s1512_s4, [#allocation5]  }
 0x123   :  { %1304 = dma.done.wait [#allocation3], 64  }
 0x124   :  { %1305 = vsyncadd [#allocation3], 4294967232 }
 0x125   :  { %1306 = dma.done.wait [#allocation5], 64  }
 0x126   :  { %1307 = vsyncadd [#allocation5], 4294967232 }
 0x127   :  { %1017 = vsyncpa [#allocation3], 1 }
 0x128   :  { %1018 = vsyncpa [#allocation5], 1 }

// kernel: _compact_and_gather.1
= control target key start
LH: loop header
LB: loop body
LE: loop exit
PB: predicated region body
PF: predicated region fallthrough
CT: control target
= control target key end

     0   :  { %10 = vsyncpa [#allocation3], 0  ;;  %v19_v1 = vlaneseq  ;;  %v1308_v2 = vmov 0.0|0.0   ;;  %vm37_vm0 = vcmask 195584   ;;  %vm1309_vm1 = vmmov 0   ;;  %s1508_s0 = inlined_call_operand.vmem [shape: s32[1,128], index: 0, kind: input, shape index: {}]   ;;  %s1509_s1 = inlined_call_operand.vmem [shape: f32[3,24], index: 1, kind: input, shape index: {}]   ;;  %s1510_s2 = inlined_call_operand.vmem [shape: f32[3,24], index: 2, kind: input, shape index: {}]   ;;  %s1511_s3 = inlined_call_operand.hbm [shape: f32[3,128], index: 3, kind: output, shape index: {0}]   ;;  %s1512_s4 = inlined_call_operand.hbm [shape: f32[3,128], index: 4, kind: output, shape index: {1}]  }
   0x1   :  { %v1019_v0 = vld [vmem:[%s1508_s0] ss:$0 sm:$0xff]  ;;  %1197 = vmatprep.subr.bf16.mxu0 %v1308_v2  ;;  %1215 = vmatprep.subr.bf16.mxu1 %v1308_v2  ;;  %v1310_v5 = vmov 0.0  }
   0x2   :  { %v30_v3 = vld [vmem:[%s1509_s1] sm:$0x7]  ;;  %v20_v4 = vshrl.u32 %v19_v1, 7  ;;  %1095 = vmatprep.mubr.msk.f32.mxu0 %vm1309_vm1, %v1310_v5  ;;  %1149 = vmatprep.mubr.msk.f32.mxu1 %vm1309_vm1, %v1310_v5 }
   0x3   :  { %v39_v6 = vsel %vm37_vm0, %v30_v3, 0  ;;  %v513_v7 = vld [vmem:[%s1510_s2] sm:$0x7] }
   0x4   :  { %11 = vsyncpa [#allocation5], 0  ;;  %v1355_v8 = vand.u32 4294901760, %v39_v6  ;;  %v515_v9 = vsel %vm37_vm0, %v513_v7, 0  ;;  %v21_v10 = vadd.s32 8, %v20_v4  ;;  %vm27_vm2 = vcmp.eq.s32.totalorder %v20_v4, %v1019_v0  ;;  %s1313_s1 = smov [#allocation2]  }
   0x5   :  { %v22_v11 = vadd.s32 16, %v20_v4  ;;  %v1357_v12 = vand.u32 4294901760, %v515_v9  ;;  %v1020_v13 = vsel %vm27_vm2, 1.0, %v1310_v5  ;;  %v1311_v22 = vmov 1.0|1.0   ;;  %s997_s2 = sshll.u32 %s1313_s1, 4  ;;  %s998_s2 = int_to_ptr.vmem [resolvable:$true] %s997_s2 }
   0x6   :  { %v1361_v14 = vsub.f32 %v39_v6, %v1355_v8  ;;  %vm28_vm3 = vcmp.eq.s32.totalorder %v21_v10, %v1019_v0  ;;  %v1363_v15 = vsub.f32 %v1020_v13, %v1020_v13  ;;  %v1312_v33 = vmov 1.0   ;;  %s1314_s20 = smov [#allocation4]   ;;  %s1260_s22 = scalar_lea.vmem %s998_s2, 64 }
   0x7   :  { %vm1365_vm4 = vcmp.eq.s32.totalorder %v22_v11, %v1019_v0  ;;  %v1370_v17 = vsub.f32 %v515_v9, %v1357_v12  ;;  %v1021_v18 = vsel %vm28_vm3, 1.0, %v1310_v5  ;;  %vm1373_vm5 = vmpackc.low %vm28_vm3, %vm27_vm2  ;;  %s1007_s21 = sshll.u32 %s1314_s20, 4  ;;  %p1261_p0 = scmp.ne.s32.totalorder %s998_s2, %s1260_s22  ;;  %s1477_s21 = int_to_ptr.vmem [resolvable:$true] %s1007_s21 }
   0x8   :  { %v111_v20 = vand.u32 4294901760, %v1361_v14  ;;  %v1022_v21 = vsel %vm1365_vm4, 1.0, %v1310_v5  ;;  %1199 = vmatpush3.bf16.msk.msra.mxu0 %vm1373_vm5, %v1311_v22  ;;  %v128_v23 = vsub.f32 %v1021_v18, %v1021_v18  ;;  %1217 = vmatpush3.bf16.msk.msra.mxu1 %vm1373_vm5, %v1311_v22  ;;  %v122_v25 = vand.u32 4294901760, %v1363_v15  ;;  %p1265_p1 = scmp.lt.s32.totalorder %s998_s2, %s998_s2  ;;  %p1266_p2 = scmp.lt.s32.totalorder %s1260_s22, %s1260_s22 }
   0x9   :  { %v587_v24 = vand.u32 4294901760, %v1370_v17  ;;  %v135_v26 = vsub.f32 %v1022_v21, %v1022_v21  ;;  %1093 = vmatprep.subr.mxu0 %v1310_v5  ;;  %1147 = vmatprep.subr.mxu1 %v1310_v5 }
   0xa   :  { %v112_v27 = vsub.f32 %v1361_v14, %v111_v20  ;;  %v123_v29 = vsub.f32 %v1363_v15, %v122_v25  ;;  %v129_v30 = vand.u32 4294901760, %v128_v23  ;;  %v1204_v41 = vpack.c.bf16 %v128_v23, %v1363_v15  ;;  %p1267_p3 = por %p1266_p2, %p1265_p1 }
   0xb   :  { %v588_v28 = vsub.f32 %v1370_v17, %v587_v24  ;;  %v136_v31 = vand.u32 4294901760, %v135_v26 }
   0xc   :  { %v113_v32 = vand.u32 4294901760, %v112_v27  ;;  %1094 = vmatpush3.msk.msra.mxu0 %vm1365_vm4, %v1312_v33  ;;  %1148 = vmatpush3.msk.msra.mxu1 %vm1365_vm4, %v1312_v33  ;;  %v124_v35 = vand.u32 4294901760, %v123_v29  ;;  %v130_v36 = vsub.f32 %v128_v23, %v129_v30  ;;  %v1210_v42 = vpack.c.bf16 %v129_v30, %v122_v25  ;;  %p1268_p4 = pnand %p1267_p3, %p1261_p0 }
   0xd   :  { %v589_v34 = vand.u32 4294901760, %v588_v28  ;;  %1200 = vmatprep.subr.bf16.mxu0 %v1308_v2  ;;  %1218 = vmatprep.subr.bf16.mxu1 %v1308_v2  ;;  %v137_v38 = vsub.f32 %v135_v26, %v136_v31 }
   0xe   :  { %1096 = vmatmul.mubr.f32.vlgmr.msra.gmra.mrb[0].mxu0 %v113_v32  ;;  %v131_v37 = vand.u32 4294901760, %v130_v36 }
   0xf   :  { %1150 = vmatmul.mubr.f32.vlgmr.msra.gmra.mrb[0].mxu1 %v589_v34  ;;  %1104 = vmatprep.mubr.msk.f32.mxu0 %vm1309_vm1, %v1310_v5  ;;  %v138_v40 = vand.u32 4294901760, %v137_v38 }
  0x10   :  { %1158 = vmatprep.mubr.msk.f32.mxu1 %vm1309_vm1, %v1310_v5  ;;  %v1201_v39 = vpack.c.bf16 %v131_v37, %v124_v35 }
  0x12   :  { %1202 = vmatpush3.bf16.msra.mxu0 %v1201_v39  ;;  %1220 = vmatpush3.bf16.msra.mxu1 %v1201_v39 }
  0x13   :  { %1102 = vmatprep.subr.mxu0 %v1310_v5  ;;  %1156 = vmatprep.subr.mxu1 %v1310_v5 }
  0x16   :  { %1103 = vmatpush3.msra.mxu0 %v138_v40  ;;  %1157 = vmatpush3.msra.mxu1 %v138_v40 }
  0x17   :  { %1105 = vmatmul.mubr.f32.vlgmr.msra.gmra.mrb[0].mxu0 %v1355_v8  ;;  %1159 = vmatmul.mubr.f32.vlgmr.msra.gmra.mrb[0].mxu1 %v1357_v12 }
  0x18   :  { %1203 = vmatprep.subr.bf16.mxu0 %v1308_v2  ;;  %1221 = vmatprep.subr.bf16.mxu1 %v1308_v2 }
  0x19   :  { %1205 = vmatpush3.bf16.msra.mxu0 %v1204_v41  ;;  %1223 = vmatpush3.bf16.msra.mxu1 %v1204_v41 }
  0x1a   :  { %1111 = vmatprep.subr.mxu0 %v1310_v5  ;;  %1165 = vmatprep.subr.mxu1 %v1310_v5 }
  0x1b   :  { %1113 = vmatprep.mubr.msk.f32.mxu0 %vm1309_vm1, %v1310_v5  ;;  %1167 = vmatprep.mubr.msk.f32.mxu1 %vm1309_vm1, %v1310_v5 }
  0x1d   :  { %1112 = vmatpush3.msra.mxu0 %v135_v26  ;;  %1166 = vmatpush3.msra.mxu1 %v135_v26 }
  0x1e   :  { %1206 = vmatprep.subr.bf16.mxu0 %v1308_v2  ;;  %1224 = vmatprep.subr.bf16.mxu1 %v1308_v2 }
  0x1f   :  { %1114 = vmatmul.mubr.f32.vlgmr.msra.gmra.mrb[0].mxu0 %v1361_v14  ;;  %1168 = vmatmul.mubr.f32.vlgmr.msra.gmra.mrb[0].mxu1 %v1370_v17 }
  0x20   :  { %1208 = vmatpush3.bf16.msk.msra.mxu0 %vm1373_vm5, %v1311_v22  ;;  %1226 = vmatpush3.bf16.msk.msra.mxu1 %vm1373_vm5, %v1311_v22 }
  0x21   :  { %1120 = vmatprep.subr.mxu0 %v1310_v5  ;;  %1174 = vmatprep.subr.mxu1 %v1310_v5 }
  0x22   :  { %1122 = vmatprep.mubr.msk.f32.mxu0 %vm1309_vm1, %v1310_v5  ;;  %1176 = vmatprep.mubr.msk.f32.mxu1 %vm1309_vm1, %v1310_v5 }
  0x24   :  { %1121 = vmatpush3.msk.msra.mxu0 %vm1365_vm4, %v1312_v33  ;;  %1175 = vmatpush3.msk.msra.mxu1 %vm1365_vm4, %v1312_v33 }
  0x25   :  { %1209 = vmatprep.subr.bf16.mxu0 %v1308_v2  ;;  %1227 = vmatprep.subr.bf16.mxu1 %v1308_v2 }
  0x27   :  { %1123 = vmatmul.mubr.f32.vlgmr.msra.gmra.mrb[0].mxu0 %v111_v20  ;;  %1177 = vmatmul.mubr.f32.vlgmr.msra.gmra.mrb[0].mxu1 %v587_v24 }
  0x28   :  { %1211 = vmatpush3.bf16.msra.mxu0 %v1210_v42  ;;  %1229 = vmatpush3.bf16.msra.mxu1 %v1210_v42 }
  0x29   :  { %1129 = vmatprep.subr.mxu0 %v1310_v5  ;;  %1183 = vmatprep.subr.mxu1 %v1310_v5 }
  0x2a   :  { %1131 = vmatprep.mubr.msk.f32.mxu0 %vm1309_vm1, %v1310_v5  ;;  %1185 = vmatprep.mubr.msk.f32.mxu1 %vm1309_vm1, %v1310_v5 }
  0x2c   :  { %1130 = vmatpush3.msra.mxu0 %v136_v31  ;;  %1184 = vmatpush3.msra.mxu1 %v136_v31 }
  0x2d   :  { %1212 = vmatprep.subr.bf16.mxu0 %v1308_v2  ;;  %1230 = vmatprep.subr.bf16.mxu1 %v1308_v2 }
  0x2f   :  { %1132 = vmatmul.mubr.f32.vlgmr.msra.gmra.mrb[0].mxu0 %v1355_v8  ;;  %1186 = vmatmul.mubr.f32.vlgmr.msra.gmra.mrb[0].mxu1 %v1357_v12 }
  0x30   :  { %1214 = vmatpush3.bf16.msk.msra.mxu0 %vm1373_vm5, %v1311_v22  ;;  %1232 = vmatpush3.bf16.msk.msra.mxu1 %vm1373_vm5, %v1311_v22 }
  0x31   :  { %1138 = vmatprep.subr.mxu0 %v1310_v5  ;;  %1192 = vmatprep.subr.mxu1 %v1310_v5 }
  0x32   :  { %1140 = vmatprep.mubr.msk.f32.mxu0 %vm1309_vm1, %v1310_v5  ;;  %1194 = vmatprep.mubr.msk.f32.mxu1 %vm1309_vm1, %v1310_v5 }
  0x34   :  { %1139 = vmatpush3.msk.msra.mxu0 %vm1365_vm4, %v1312_v33  ;;  %1193 = vmatpush3.msk.msra.mxu1 %vm1365_vm4, %v1312_v33 }
  0x37   :  { %1141 = vmatmul.mubr.f32.vlgmr.msra.gmra.mrb[0].mxu0 %v1355_v8  ;;  %1195 = vmatmul.mubr.f32.vlgmr.msra.gmra.mrb[0].mxu1 %v1357_v12 }
 0x10a   :  { %v509_v43 = vpop.f32.mrb[0].mxu0  ;;  %v985_v44 = vpop.f32.mrb[0].mxu1 }
 0x10b   :  { %989 = vst [vmem:[#allocation2] sm:$0x7] %v509_v43  ;;  %990 = vst [vmem:[#allocation4] sm:$0x7] %v985_v44  ;;  %v1142_v45 = vpop.f32.mrb[1].mxu0  ;;  %v1196_v46 = vpop.f32.mrb[1].mxu1 }
 0x10c   :  { %1271 = shalt.err (!%p1268_p4)
}
 0x10d   :  { %s1272_s25 = scalar_lea.hbm %s1511_s3, 64 }
 0x10e   :  { %p1273_p5 = scmp.ne.s32.totalorder %s1511_s3, %s1272_s25  ;;  %p1276_p6 = scmp.lt.u32.totalorder %s1272_s25, %s1511_s3 }
 0x110   :  { %p1278_p7 = pnand %p1276_p6, %p1273_p5 }
 0x112   :  { %1281 = shalt.err (!%p1278_p7)
}
 0x113   :  { %1000 = dma.vmem_to_hbm [thread:$0]  %s998_s2, 64, %s1511_s3, [#allocation3]  }
 0x114   :  { %s1282_s6 = scalar_lea.vmem %s1477_s21, 64  ;;  %p1287_p9 = scmp.lt.s32.totalorder %s1477_s21, %s1477_s21 }
 0x115   :  { %p1283_p8 = scmp.ne.s32.totalorder %s1477_s21, %s1282_s6  ;;  %p1288_p10 = scmp.lt.s32.totalorder %s1282_s6, %s1282_s6 }
 0x117   :  { %p1289_p11 = por %p1288_p10, %p1287_p9 }
 0x119   :  { %p1290_p12 = pnand %p1289_p11, %p1283_p8 }
 0x11b   :  { %1293 = shalt.err (!%p1290_p12)
}
 0x11c   :  { %s1294_s9 = scalar_lea.hbm %s1512_s4, 64 }
 0x11d   :  { %p1295_p13 = scmp.ne.s32.totalorder %s1512_s4, %s1294_s9  ;;  %p1298_p0 = scmp.lt.u32.totalorder %s1294_s9, %s1512_s4 }
 0x11f   :  { %p1300_p1 = pnand %p1298_p0, %p1295_p13 }
 0x121   :  { %1303 = shalt.err (!%p1300_p1)
}
 0x122   :  { %1010 = dma.vmem_to_hbm [thread:$0]  %s1477_s21, 64, %s1512_s4, [#allocation5]  }
 0x123   :  { %1304 = dma.done.wait [#allocation3], 64  }
 0x124   :  { %1305 = vsyncadd [#allocation3], 4294967232 }
 0x125   :  { %1306 = dma.done.wait [#allocation5], 64  }
 0x126   :  { %1307 = vsyncadd [#allocation5], 4294967232 }
 0x127   :  { %1017 = vsyncpa [#allocation3], 1 }
 0x128   :  { %1018 = vsyncpa [#allocation5], 1 }

</bundles_post_ra>
